<compile_context>
chip_gen: v7x
topology: tpu7x:2x2x1
jax: 0.10.0
libtpu: 0.0.40
codegen_flags: <defaults>
</compile_context>

<pallas_src>
import functools

import jax
import jax.numpy as jnp
from jax.experimental import pallas as pl
from jax.experimental.pallas import tpu as pltpu


LANE = 128                      # TPU lane width
B_TILE = 512                    # batch rows per grid step (fits v7x VMEM budget)
NX_TILE = 2048                  # trunk/output lane columns per grid step
VMEM_LIMIT_BYTES = 48 * 1024 * 1024   # explicit scoped-VMEM budget (v7x-safe)


def _round_up(n, m):
    return ((n + m - 1) // m) * m


def _nbytes(a):
    return a.size * a.dtype.itemsize


# ----------------------------------------------------------------------------
# Kernel 1: trunk MLP in transposed layout  ->  basis_T tile (p_pad, tn)
# ----------------------------------------------------------------------------
def _trunk_basis_kernel(x_ref, *refs, n_layers, compute_dtype):
    """refs = (W0^T, b0^T, W1^T, b1^T, ..., out).

    Layer 0 has contraction dim K == 1 (scalar coordinate), so it is a VPU
    broadcast multiply instead of a degenerate K=1 MXU matmul.
    """
    f32 = jnp.float32
    o_ref = refs[-1]
    params = refs[:-1]

    # layer 0: (H,1)*(1,tn) + (H,1) -> (H,tn), all f32 on the VPU.
    t = params[0][...] * x_ref[...] + params[1][...]
    for i in range(1, n_layers):
        t = jnp.tanh(t)                                   # f32 tanh (v5e-safe)
        w = params[2 * i][...]                            # (out, in) compute_dtype
        b = params[2 * i + 1][...]                        # (out, 1) f32
        t = jnp.dot(w, t.astype(compute_dtype), preferred_element_type=f32) + b
    o_ref[...] = t.astype(o_ref.dtype)                    # (p_pad, tn) lane-dense


# ----------------------------------------------------------------------------
# Kernel 2: branch MLP (once per B-tile) + final contraction
# ----------------------------------------------------------------------------
def _branch_contract_kernel(phi_ref, basis_ref, *refs, n_layers, compute_dtype):
    """refs = (W0, b0, W1, b1, ..., out, weights_scratch)."""
    f32 = jnp.float32
    o_ref = refs[-2]
    w_scratch = refs[-1]
    params = refs[:-2]

    # Branch MLP is independent of the nxp tile: compute once per B-tile.
    @pl.when(pl.program_id(1) == 0)
    def _():
        h = phi_ref[...]                                  # compute_dtype
        for i in range(n_layers):
            w = params[2 * i][...]                        # (in, out) compute_dtype
            b = params[2 * i + 1][...]                    # (1, out)  f32
            h = jnp.dot(h.astype(compute_dtype), w, preferred_element_type=f32) + b
            if i < n_layers - 1:
                h = jnp.tanh(h)
        w_scratch[...] = h.astype(compute_dtype)          # (tb, p_pad)

    # (tb, p_pad) @ (p_pad, tn) -> (tb, tn); lane axis is a 128-multiple.
    o_ref[...] = jnp.dot(w_scratch[...], basis_ref[...],
                         preferred_element_type=f32).astype(o_ref.dtype)


# ----------------------------------------------------------------------------
# Wrapper
# ----------------------------------------------------------------------------
def deeponet_forward(branch_params, trunk_params, phi, x, *,
                     compute_dtype=jnp.bfloat16):
    """branch_params / trunk_params: lists of (W (in,out), b (1,out)). Returns (B, nx)."""
    f32 = jnp.float32
    B, nx_in = phi.shape
    nx = x.shape[0]
    assert x.shape[1] == 1 and trunk_params[0][0].shape[0] == 1, "trunk input dim must be 1"
    assert branch_params[-1][0].shape[1] == trunk_params[-1][0].shape[1], "latent dims differ"

    # ---- padded extents & tile sizes ----
    nxp = _round_up(max(nx, LANE), LANE)
    if nxp <= NX_TILE:
        tn = nxp
    else:
        tn = NX_TILE
        nxp = _round_up(nxp, tn)

    if B <= B_TILE:
        tb, Bp = B, B
    else:
        tb = B_TILE
        Bp = _round_up(B, tb)

    # Feature widths padded to 128 multiples -> lane-dense MXU operands.
    b_sizes = [nx_in] + [w.shape[1] for (w, _) in branch_params]
    b_sizes_p = [_round_up(s, LANE) for s in b_sizes]
    t_sizes = [1] + [w.shape[1] for (w, _) in trunk_params]
    t_sizes_p = [1] + [_round_up(s, LANE) for s in t_sizes[1:]]
    nx_in_pad = b_sizes_p[0]
    p_pad = b_sizes_p[-1]

    # ---- padded / cast parameters (zero padding keeps semantics exact) ----
    branch_flat = []
    for li, (w, b) in enumerate(branch_params):
        wp = (jnp.zeros((b_sizes_p[li], b_sizes_p[li + 1]), compute_dtype)
              .at[:w.shape[0], :w.shape[1]].set(w.astype(compute_dtype)))
        bp = (jnp.zeros((1, b_sizes_p[li + 1]), f32)
              .at[:, :b.shape[1]].set(b.astype(f32)))
        branch_flat += [wp, bp]

    trunk_flat = []
    for li, (w, b) in enumerate(trunk_params):
        wdt = f32 if li == 0 else compute_dtype           # layer 0 stays on the VPU
        wtp = (jnp.zeros((t_sizes_p[li + 1], t_sizes_p[li]), wdt)
               .at[:w.shape[1], :w.shape[0]].set(w.T.astype(wdt)))
        btp = (jnp.zeros((t_sizes_p[li + 1], 1), f32)
               .at[:b.shape[1], :].set(b.T.astype(f32)))
        trunk_flat += [wtp, btp]

    # ---- padded inputs (copies only when actually needed) ----
    if (Bp, nx_in_pad) != (B, nx_in) or phi.dtype != compute_dtype:
        phi_p = (jnp.zeros((Bp, nx_in_pad), compute_dtype)
                 .at[:B, :nx_in].set(phi.astype(compute_dtype)))
    else:
        phi_p = phi
    x_row = jnp.zeros((1, nxp), f32).at[0, :nx].set(x[:, 0].astype(f32))

    n_branch = len(branch_params)
    n_trunk = len(trunk_params)
    itemsize_c = jnp.dtype(compute_dtype).itemsize

    # ------------------------------------------------------------------
    # Pass 1: basis_T = trunk(x)^T, shape (p_pad, nxp), computed once.
    # ------------------------------------------------------------------
    trunk_in_specs = [pl.BlockSpec((1, tn), lambda j: (0, j))]
    for a in trunk_flat:
        trunk_in_specs.append(pl.BlockSpec(a.shape, lambda j: (0, 0)))   # resident weights

    t_flops = 2 * t_sizes_p[1] * nxp
    for li in range(1, n_trunk):
        t_flops += 2 * t_sizes_p[li] * t_sizes_p[li + 1] * nxp
    t_trans = nxp * sum(t_sizes_p[1:-1]) if n_trunk > 1 else 0
    t_bytes = (_nbytes(x_row) + sum(_nbytes(a) for a in trunk_flat)
               + p_pad * nxp * itemsize_c)

    basis_t = pl.pallas_call(
        functools.partial(_trunk_basis_kernel, n_layers=n_trunk,
                          compute_dtype=compute_dtype),
        out_shape=jax.ShapeDtypeStruct((p_pad, nxp), compute_dtype),
        grid_spec=pltpu.PrefetchScalarGridSpec(
            num_scalar_prefetch=0,
            grid=(nxp // tn,),
            in_specs=trunk_in_specs,
            out_specs=pl.BlockSpec((p_pad, tn), lambda j: (0, j)),
        ),
        compiler_params=pltpu.CompilerParams(
            dimension_semantics=("parallel",),
            vmem_limit_bytes=VMEM_LIMIT_BYTES),
        cost_estimate=pl.CostEstimate(flops=int(t_flops),
                                      transcendentals=int(t_trans),
                                      bytes_accessed=int(t_bytes)),
    )(x_row, *trunk_flat)

    # ------------------------------------------------------------------
    # Pass 2: branch MLP + contraction, grid over (B tiles, nxp tiles).
    # ------------------------------------------------------------------
    bc_in_specs = [
        pl.BlockSpec((tb, nx_in_pad), lambda i, j: (i, 0)),          # phi tile
        pl.BlockSpec((p_pad, tn), lambda i, j: (0, j)),              # basis_T tile
    ]
    for a in branch_flat:
        bc_in_specs.append(pl.BlockSpec(a.shape, lambda i, j: (0, 0)))  # resident weights

    b_flops = 2 * Bp * p_pad * nxp
    for li in range(n_branch):
        b_flops += 2 * Bp * b_sizes_p[li] * b_sizes_p[li + 1]
    b_trans = Bp * sum(b_sizes_p[1:-1]) if n_branch > 1 else 0
    b_bytes = (_nbytes(phi_p) + p_pad * nxp * itemsize_c
               + sum(_nbytes(a) for a in branch_flat) + Bp * nxp * 4)

    out = pl.pallas_call(
        functools.partial(_branch_contract_kernel, n_layers=n_branch,
                          compute_dtype=compute_dtype),
        out_shape=jax.ShapeDtypeStruct((Bp, nxp), f32),
        grid_spec=pltpu.PrefetchScalarGridSpec(
            num_scalar_prefetch=0,
            grid=(Bp // tb, nxp // tn),
            in_specs=bc_in_specs,
            out_specs=pl.BlockSpec((tb, tn), lambda i, j: (i, j)),
            scratch_shapes=[pltpu.VMEM((tb, p_pad), compute_dtype)],
        ),
        compiler_params=pltpu.CompilerParams(
            dimension_semantics=("parallel", "arbitrary"),   # batch axis -> 2 TCs on v7x
            vmem_limit_bytes=VMEM_LIMIT_BYTES),
        cost_estimate=pl.CostEstimate(flops=int(b_flops),
                                      transcendentals=int(b_trans),
                                      bytes_accessed=int(b_bytes)),
    )(phi_p, basis_t, *branch_flat)

    # Skip the slice (an extra HBM copy) when no padding was applied.
    if (Bp, nxp) != (B, nx):
        out = out[:B, :nx]
    return out


# ----------------------------------------------------------------------------
# Params + plain-JAX reference
# ----------------------------------------------------------------------------
def init_mlp_params(key, layer_sizes):
    """Deterministic MLP params: list of (W (in,out), b (1,out))."""
    params = []
    for fan_in, fan_out in zip(layer_sizes[:-1], layer_sizes[1:]):
        key, kw, kb = jax.random.split(key, 3)
        scale = 1.0 / jnp.sqrt(fan_in)
        w = jax.random.uniform(kw, (fan_in, fan_out), jnp.float32, -scale, scale)
        b = jax.random.uniform(kb, (1, fan_out), jnp.float32, -scale, scale)
        params.append((w, b))
    return params


def deeponet_reference(branch_params, trunk_params, phi, x):
    def mlp(params, h):
        for i, (w, b) in enumerate(params):
            h = h @ w + b
            if i < len(params) - 1:
                h = jnp.tanh(h)
        return h
    return mlp(branch_params, phi) @ mlp(trunk_params, x).T


if __name__ == "__main__":
    # Small, MLP-consistent shapes:
    #   nx = 16 grid points, batch B = 2 source functions,
    #   branch: 16 -> 32 -> 32 -> 16 (latent dim p = 16)
    #   trunk :  1 -> 32 -> 32 -> 16
    nx = 16
    B = 2
    hidden = 32
    p = 16
    domain = (0.0, 1.0)

    key = jax.random.PRNGKey(0)
    k_phi, k_branch, k_trunk = jax.random.split(key, 3)

    phi = jax.random.normal(k_phi, (B, nx), jnp.float32)                           # branch input
    x = jnp.linspace(domain[0], domain[1], nx, dtype=jnp.float32).reshape(-1, 1)   # trunk input

    branch_params = init_mlp_params(k_branch, [nx, hidden, hidden, p])
    trunk_params = init_mlp_params(k_trunk, [1, hidden, hidden, p])

    ref = deeponet_reference(branch_params, trunk_params, phi, x)

    # f32 MXU operands: exact-ish check against the reference.
    fwd_f32 = jax.jit(functools.partial(deeponet_forward, compute_dtype=jnp.float32))
    out_f32 = jax.block_until_ready(fwd_f32(branch_params, trunk_params, phi, x))
    assert out_f32.shape == (B, nx)
    assert jnp.allclose(out_f32, ref, atol=1e-4, rtol=1e-4), \
        float(jnp.max(jnp.abs(out_f32 - ref)))

    # bf16 MXU operands / f32 accumulation (default perf path): looser tolerance.
    fwd_bf16 = jax.jit(functools.partial(deeponet_forward, compute_dtype=jnp.bfloat16))
    out_bf16 = jax.block_until_ready(fwd_bf16(branch_params, trunk_params, phi, x))
    assert out_bf16.shape == (B, nx)
    assert jnp.allclose(out_bf16, ref, atol=5e-2, rtol=5e-2), \
        float(jnp.max(jnp.abs(out_bf16 - ref)))

    print("KERNEL_OK")
</pallas_src>

<mosaic_0001>
module attributes {stable_mosaic.version = 11 : i64} {
  func.func @_trunk_basis_kernel(%arg0: i32, %arg1: memref<1x128xf32, #tpu.memory_space<vmem>>, %arg2: memref<128x1xf32, #tpu.memory_space<vmem>>, %arg3: memref<128x1xf32, #tpu.memory_space<vmem>>, %arg4: memref<128x128xf32, #tpu.memory_space<vmem>>, %arg5: memref<128x1xf32, #tpu.memory_space<vmem>>, %arg6: memref<128x128xf32, #tpu.memory_space<vmem>>, %arg7: memref<128x1xf32, #tpu.memory_space<vmem>>, %arg8: memref<128x128xf32, #tpu.memory_space<vmem>>) attributes {dimension_semantics = [#tpu.dimension_semantics<parallel>], iteration_bounds = array<i64: 1>, scalar_prefetch = 0 : i64, scratch_operands = 0 : i64, tpu.core_type = #tpu.core_type<tc>, window_params = [{transform_indices = @transform_0, window_bounds = array<i64: 1, 128>}, {pipeline_mode = #tpu.pipeline_mode<synchronous>, transform_indices = @transform_1, window_bounds = array<i64: 128, 1>}, {pipeline_mode = #tpu.pipeline_mode<synchronous>, transform_indices = @transform_2, window_bounds = array<i64: 128, 1>}, {pipeline_mode = #tpu.pipeline_mode<synchronous>, transform_indices = @transform_3, window_bounds = array<i64: 128, 128>}, {pipeline_mode = #tpu.pipeline_mode<synchronous>, transform_indices = @transform_4, window_bounds = array<i64: 128, 1>}, {pipeline_mode = #tpu.pipeline_mode<synchronous>, transform_indices = @transform_5, window_bounds = array<i64: 128, 128>}, {pipeline_mode = #tpu.pipeline_mode<synchronous>, transform_indices = @transform_6, window_bounds = array<i64: 128, 1>}, {transform_indices = @transform_7, window_bounds = array<i64: 128, 128>}]} {
    %c0 = arith.constant 0 : index
    %c0_0 = arith.constant 0 : index
    %0 = vector.load %arg2[%c0, %c0_0] : memref<128x1xf32, #tpu.memory_space<vmem>>, vector<128x1xf32>
    %c0_1 = arith.constant 0 : index
    %c0_2 = arith.constant 0 : index
    %1 = vector.load %arg1[%c0_1, %c0_2] : memref<1x128xf32, #tpu.memory_space<vmem>>, vector<1x128xf32>
    %2 = vector.broadcast %0 : vector<128x1xf32> to vector<128x128xf32>
    %3 = vector.broadcast %1 : vector<1x128xf32> to vector<128x128xf32>
    %4 = arith.mulf %2, %3 : vector<128x128xf32>
    %c0_3 = arith.constant 0 : index
    %c0_4 = arith.constant 0 : index
    %5 = vector.load %arg3[%c0_3, %c0_4] : memref<128x1xf32, #tpu.memory_space<vmem>>, vector<128x1xf32>
    %6 = vector.broadcast %5 : vector<128x1xf32> to vector<128x128xf32>
    %7 = arith.addf %4, %6 : vector<128x128xf32>
    %8 = math.tanh %7 : vector<128x128xf32>
    %c0_5 = arith.constant 0 : index
    %c0_6 = arith.constant 0 : index
    %9 = vector.load %arg4[%c0_5, %c0_6] : memref<128x128xf32, #tpu.memory_space<vmem>>, vector<128x128xf32>
    %c0_7 = arith.constant 0 : index
    %c0_8 = arith.constant 0 : index
    %10 = vector.load %arg5[%c0_7, %c0_8] : memref<128x1xf32, #tpu.memory_space<vmem>>, vector<128x1xf32>
    %cst = arith.constant dense<0.000000e+00> : vector<128x128xf32>
    %11 = tpu.matmul %9, %8, %cst {dimension_numbers = #tpu.dot_dimension_numbers<[1], [0], [0], [1], [0, 0, 1, 1], [], []>} : vector<128x128xf32>, vector<128x128xf32>, vector<128x128xf32> -> vector<128x128xf32>
    %12 = vector.broadcast %10 : vector<128x1xf32> to vector<128x128xf32>
    %13 = arith.addf %11, %12 : vector<128x128xf32>
    %14 = math.tanh %13 : vector<128x128xf32>
    %c0_9 = arith.constant 0 : index
    %c0_10 = arith.constant 0 : index
    %15 = vector.load %arg6[%c0_9, %c0_10] : memref<128x128xf32, #tpu.memory_space<vmem>>, vector<128x128xf32>
    %c0_11 = arith.constant 0 : index
    %c0_12 = arith.constant 0 : index
    %16 = vector.load %arg7[%c0_11, %c0_12] : memref<128x1xf32, #tpu.memory_space<vmem>>, vector<128x1xf32>
    %cst_13 = arith.constant dense<0.000000e+00> : vector<128x128xf32>
    %17 = tpu.matmul %15, %14, %cst_13 {dimension_numbers = #tpu.dot_dimension_numbers<[1], [0], [0], [1], [0, 0, 1, 1], [], []>} : vector<128x128xf32>, vector<128x128xf32>, vector<128x128xf32> -> vector<128x128xf32>
    %18 = vector.broadcast %16 : vector<128x1xf32> to vector<128x128xf32>
    %19 = arith.addf %17, %18 : vector<128x128xf32>
    %c0_14 = arith.constant 0 : index
    %c0_15 = arith.constant 0 : index
    %20 = vector.load %arg8[%c0_14, %c0_15] : memref<128x128xf32, #tpu.memory_space<vmem>>, vector<128x128xf32>
    tpu.vector_store %arg8[%c0_14, %c0_15], %19 {strides = array<i32>} : memref<128x128xf32, #tpu.memory_space<vmem>>, vector<128x128xf32>,
    return
  }
  func.func @transform_0(%arg0: i32) -> (i32, i32) {
    %c0_i32 = arith.constant 0 : i32
    %c0_i32_0 = arith.constant 0 : i32
    return %c0_i32, %arg0 : i32, i32
  }
  func.func @transform_1(%arg0: i32) -> (i32, i32) {
    %c0_i32 = arith.constant 0 : i32
    %c0_i32_0 = arith.constant 0 : i32
    %c0_i32_1 = arith.constant 0 : i32
    return %c0_i32, %c0_i32_0 : i32, i32
  }
  func.func @transform_2(%arg0: i32) -> (i32, i32) {
    %c0_i32 = arith.constant 0 : i32
    %c0_i32_0 = arith.constant 0 : i32
    %c0_i32_1 = arith.constant 0 : i32
    return %c0_i32, %c0_i32_0 : i32, i32
  }
  func.func @transform_3(%arg0: i32) -> (i32, i32) {
    %c0_i32 = arith.constant 0 : i32
    %c0_i32_0 = arith.constant 0 : i32
    %c0_i32_1 = arith.constant 0 : i32
    return %c0_i32, %c0_i32_0 : i32, i32
  }
  func.func @transform_4(%arg0: i32) -> (i32, i32) {
    %c0_i32 = arith.constant 0 : i32
    %c0_i32_0 = arith.constant 0 : i32
    %c0_i32_1 = arith.constant 0 : i32
    return %c0_i32, %c0_i32_0 : i32, i32
  }
  func.func @transform_5(%arg0: i32) -> (i32, i32) {
    %c0_i32 = arith.constant 0 : i32
    %c0_i32_0 = arith.constant 0 : i32
    %c0_i32_1 = arith.constant 0 : i32
    return %c0_i32, %c0_i32_0 : i32, i32
  }
  func.func @transform_6(%arg0: i32) -> (i32, i32) {
    %c0_i32 = arith.constant 0 : i32
    %c0_i32_0 = arith.constant 0 : i32
    %c0_i32_1 = arith.constant 0 : i32
    return %c0_i32, %c0_i32_0 : i32, i32
  }
  func.func @transform_7(%arg0: i32) -> (i32, i32) {
    %c0_i32 = arith.constant 0 : i32
    %c0_i32_0 = arith.constant 0 : i32
    return %c0_i32, %arg0 : i32, i32
  }
}

module attributes {stable_mosaic.version = 11 : i64} {
  func.func @_branch_contract_kernel(%arg0: i32, %arg1: i32, %arg2: memref<2x128xf32, #tpu.memory_space<vmem>>, %arg3: memref<128x128xf32, #tpu.memory_space<vmem>>, %arg4: memref<128x128xf32, #tpu.memory_space<vmem>>, %arg5: memref<1x128xf32, #tpu.memory_space<vmem>>, %arg6: memref<128x128xf32, #tpu.memory_space<vmem>>, %arg7: memref<1x128xf32, #tpu.memory_space<vmem>>, %arg8: memref<128x128xf32, #tpu.memory_space<vmem>>, %arg9: memref<1x128xf32, #tpu.memory_space<vmem>>, %arg10: memref<2x128xf32, #tpu.memory_space<vmem>>, %arg11: memref<2x128xf32, #tpu.memory_space<vmem>>) attributes {dimension_semantics = [#tpu.dimension_semantics<parallel>, #tpu.dimension_semantics<arbitrary>], iteration_bounds = array<i64: 1, 1>, scalar_prefetch = 0 : i64, scratch_operands = 1 : i64, tpu.core_type = #tpu.core_type<tc>, window_params = [{transform_indices = @transform_0, window_bounds = array<i64: 2, 128>}, {transform_indices = @transform_1, window_bounds = array<i64: 128, 128>}, {pipeline_mode = #tpu.pipeline_mode<synchronous>, transform_indices = @transform_2, window_bounds = array<i64: 128, 128>}, {pipeline_mode = #tpu.pipeline_mode<synchronous>, transform_indices = @transform_3, window_bounds = array<i64: 1, 128>}, {pipeline_mode = #tpu.pipeline_mode<synchronous>, transform_indices = @transform_4, window_bounds = array<i64: 128, 128>}, {pipeline_mode = #tpu.pipeline_mode<synchronous>, transform_indices = @transform_5, window_bounds = array<i64: 1, 128>}, {pipeline_mode = #tpu.pipeline_mode<synchronous>, transform_indices = @transform_6, window_bounds = array<i64: 128, 128>}, {pipeline_mode = #tpu.pipeline_mode<synchronous>, transform_indices = @transform_7, window_bounds = array<i64: 1, 128>}, {transform_indices = @transform_8, window_bounds = array<i64: 2, 128>}]} {
    %c0_i32 = arith.constant 0 : i32
    %0 = arith.cmpi eq, %arg1, %c0_i32 : i32
    %1 = arith.extui %0 : i1 to i32
    %c0_i32_0 = arith.constant 0 : i32
    %2 = arith.cmpi ne, %1, %c0_i32_0 : i32
    scf.if %2 {
      %c0_6 = arith.constant 0 : index
      %c0_7 = arith.constant 0 : index
      %7 = vector.load %arg2[%c0_6, %c0_7] : memref<2x128xf32, #tpu.memory_space<vmem>>, vector<2x128xf32>
      %c0_8 = arith.constant 0 : index
      %c0_9 = arith.constant 0 : index
      %8 = vector.load %arg4[%c0_8, %c0_9] : memref<128x128xf32, #tpu.memory_space<vmem>>, vector<128x128xf32>
      %c0_10 = arith.constant 0 : index
      %c0_11 = arith.constant 0 : index
      %9 = vector.load %arg5[%c0_10, %c0_11] : memref<1x128xf32, #tpu.memory_space<vmem>>, vector<1x128xf32>
      %cst_12 = arith.constant dense<0.000000e+00> : vector<2x128xf32>
      %10 = tpu.matmul %7, %8, %cst_12 {dimension_numbers = #tpu.dot_dimension_numbers<[1], [0], [0], [1], [0, 0, 1, 1], [], []>} : vector<2x128xf32>, vector<128x128xf32>, vector<2x128xf32> -> vector<2x128xf32>
      %11 = vector.broadcast %9 : vector<1x128xf32> to vector<2x128xf32>
      %12 = arith.addf %10, %11 : vector<2x128xf32>
      %13 = math.tanh %12 : vector<2x128xf32>
      %c0_13 = arith.constant 0 : index
      %c0_14 = arith.constant 0 : index
      %14 = vector.load %arg6[%c0_13, %c0_14] : memref<128x128xf32, #tpu.memory_space<vmem>>, vector<128x128xf32>
      %c0_15 = arith.constant 0 : index
      %c0_16 = arith.constant 0 : index
      %15 = vector.load %arg7[%c0_15, %c0_16] : memref<1x128xf32, #tpu.memory_space<vmem>>, vector<1x128xf32>
      %cst_17 = arith.constant dense<0.000000e+00> : vector<2x128xf32>
      %16 = tpu.matmul %13, %14, %cst_17 {dimension_numbers = #tpu.dot_dimension_numbers<[1], [0], [0], [1], [0, 0, 1, 1], [], []>} : vector<2x128xf32>, vector<128x128xf32>, vector<2x128xf32> -> vector<2x128xf32>
      %17 = vector.broadcast %15 : vector<1x128xf32> to vector<2x128xf32>
      %18 = arith.addf %16, %17 : vector<2x128xf32>
      %19 = math.tanh %18 : vector<2x128xf32>
      %c0_18 = arith.constant 0 : index
      %c0_19 = arith.constant 0 : index
      %20 = vector.load %arg8[%c0_18, %c0_19] : memref<128x128xf32, #tpu.memory_space<vmem>>, vector<128x128xf32>
      %c0_20 = arith.constant 0 : index
      %c0_21 = arith.constant 0 : index
      %21 = vector.load %arg9[%c0_20, %c0_21] : memref<1x128xf32, #tpu.memory_space<vmem>>, vector<1x128xf32>
      %cst_22 = arith.constant dense<0.000000e+00> : vector<2x128xf32>
      %22 = tpu.matmul %19, %20, %cst_22 {dimension_numbers = #tpu.dot_dimension_numbers<[1], [0], [0], [1], [0, 0, 1, 1], [], []>} : vector<2x128xf32>, vector<128x128xf32>, vector<2x128xf32> -> vector<2x128xf32>
      %23 = vector.broadcast %21 : vector<1x128xf32> to vector<2x128xf32>
      %24 = arith.addf %22, %23 : vector<2x128xf32>
      %c0_23 = arith.constant 0 : index
      %c0_24 = arith.constant 0 : index
      %25 = vector.load %arg11[%c0_23, %c0_24] : memref<2x128xf32, #tpu.memory_space<vmem>>, vector<2x128xf32>
      tpu.vector_store %arg11[%c0_23, %c0_24], %24 {strides = array<i32>} : memref<2x128xf32, #tpu.memory_space<vmem>>, vector<2x128xf32>,
    } else {
    }
    %c0 = arith.constant 0 : index
    %c0_1 = arith.constant 0 : index
    %3 = vector.load %arg11[%c0, %c0_1] : memref<2x128xf32, #tpu.memory_space<vmem>>, vector<2x128xf32>
    %c0_2 = arith.constant 0 : index
    %c0_3 = arith.constant 0 : index
    %4 = vector.load %arg3[%c0_2, %c0_3] : memref<128x128xf32, #tpu.memory_space<vmem>>, vector<128x128xf32>
    %cst = arith.constant dense<0.000000e+00> : vector<2x128xf32>
    %5 = tpu.matmul %3, %4, %cst {dimension_numbers = #tpu.dot_dimension_numbers<[1], [0], [0], [1], [0, 0, 1, 1], [], []>} : vector<2x128xf32>, vector<128x128xf32>, vector<2x128xf32> -> vector<2x128xf32>
    %c0_4 = arith.constant 0 : index
    %c0_5 = arith.constant 0 : index
    %6 = vector.load %arg10[%c0_4, %c0_5] : memref<2x128xf32, #tpu.memory_space<vmem>>, vector<2x128xf32>
    tpu.vector_store %arg10[%c0_4, %c0_5], %5 {strides = array<i32>} : memref<2x128xf32, #tpu.memory_space<vmem>>, vector<2x128xf32>,
    return
  }
  func.func @transform_0(%arg0: i32, %arg1: i32) -> (i32, i32) {
    %c0_i32 = arith.constant 0 : i32
    %c0_i32_0 = arith.constant 0 : i32
    return %arg0, %c0_i32 : i32, i32
  }
  func.func @transform_1(%arg0: i32, %arg1: i32) -> (i32, i32) {
    %c0_i32 = arith.constant 0 : i32
    %c0_i32_0 = arith.constant 0 : i32
    return %c0_i32, %arg1 : i32, i32
  }
  func.func @transform_2(%arg0: i32, %arg1: i32) -> (i32, i32) {
    %c0_i32 = arith.constant 0 : i32
    %c0_i32_0 = arith.constant 0 : i32
    %c0_i32_1 = arith.constant 0 : i32
    return %c0_i32, %c0_i32_0 : i32, i32
  }
  func.func @transform_3(%arg0: i32, %arg1: i32) -> (i32, i32) {
    %c0_i32 = arith.constant 0 : i32
    %c0_i32_0 = arith.constant 0 : i32
    %c0_i32_1 = arith.constant 0 : i32
    return %c0_i32, %c0_i32_0 : i32, i32
  }
  func.func @transform_4(%arg0: i32, %arg1: i32) -> (i32, i32) {
    %c0_i32 = arith.constant 0 : i32
    %c0_i32_0 = arith.constant 0 : i32
    %c0_i32_1 = arith.constant 0 : i32
    return %c0_i32, %c0_i32_0 : i32, i32
  }
  func.func @transform_5(%arg0: i32, %arg1: i32) -> (i32, i32) {
    %c0_i32 = arith.constant 0 : i32
    %c0_i32_0 = arith.constant 0 : i32
    %c0_i32_1 = arith.constant 0 : i32
    return %c0_i32, %c0_i32_0 : i32, i32
  }
  func.func @transform_6(%arg0: i32, %arg1: i32) -> (i32, i32) {
    %c0_i32 = arith.constant 0 : i32
    %c0_i32_0 = arith.constant 0 : i32
    %c0_i32_1 = arith.constant 0 : i32
    return %c0_i32, %c0_i32_0 : i32, i32
  }
  func.func @transform_7(%arg0: i32, %arg1: i32) -> (i32, i32) {
    %c0_i32 = arith.constant 0 : i32
    %c0_i32_0 = arith.constant 0 : i32
    %c0_i32_1 = arith.constant 0 : i32
    return %c0_i32, %c0_i32_0 : i32, i32
  }
  func.func @transform_8(%arg0: i32, %arg1: i32) -> (i32, i32) {
    %c0_i32 = arith.constant 0 : i32
    return %arg0, %arg1 : i32, i32
  }
}

</mosaic_0001>

<bundles_post_ra>
// kernel: deeponet_forward.3
= control target key start
LH: loop header
LB: loop body
LE: loop exit
PB: predicated region body
PF: predicated region fallthrough
CT: control target
= control target key end

     0   :  { %v758_v3 = vmov 0.0|0.0   ;;  %vm759_vm0 = vmmov 0   ;;  %v760_v6 = vmov 0.0   ;;  %s1063_s0 = inlined_call_operand.vmem [shape: f32[2,128], index: 0, kind: input, shape index: {}]   ;;  %s1064_s1 = inlined_call_operand.vmem [shape: f32[128,128], index: 1, kind: input, shape index: {}]   ;;  %s1065_s2 = inlined_call_operand.vmem [shape: f32[128,128], index: 2, kind: input, shape index: {}]   ;;  %s1066_s3 = inlined_call_operand.vmem [shape: f32[1,128], index: 3, kind: input, shape index: {}]   ;;  %s1067_s4 = inlined_call_operand.vmem [shape: f32[128,128], index: 4, kind: input, shape index: {}]   ;;  %s1068_s5 = inlined_call_operand.vmem [shape: f32[1,128], index: 5, kind: input, shape index: {}]   ;;  %s1069_s6 = inlined_call_operand.vmem [shape: f32[128,128], index: 6, kind: input, shape index: {}]   ;;  %s1070_s7 = inlined_call_operand.vmem [shape: f32[1,128], index: 7, kind: input, shape index: {}]   ;;  %s1071_s8 = inlined_call_operand.hbm [shape: f32[2,128], index: 8, kind: output, shape index: {}]  }
   0x1   :  { %v35_v0 = vld [vmem:[%s1065_s2] sm:$0xff]  ;;  %v36_v1 = vld [vmem:[%s1065_s2 + $0x8] sm:$0xff]  ;;  %v37_v2 = vld [vmem:[%s1065_s2 + $0x10] sm:$0xff]  ;;  %630 = vmatprep.subr.bf16.mxu0 %v758_v3  ;;  %522 = vmatprep.mubr.msk.f32.mxu0 %vm759_vm0, %v760_v6 }
   0x2   :  { %v631_v4 = vpack.c.bf16 %v36_v1, %v35_v0  ;;  %v38_v5 = vld [vmem:[%s1065_s2 + $0x18] sm:$0xff]  ;;  %654 = vmatprep.subr.bf16.mxu1 %v758_v3  ;;  %557 = vmatprep.mubr.msk.f32.mxu1 %vm759_vm0, %v760_v6  ;;  %v39_v8 = vld [vmem:[%s1065_s2 + $0x20] sm:$0xff]  ;;  %v40_v9 = vld [vmem:[%s1065_s2 + $0x28] sm:$0xff] }
   0x3   :  { %v634_v7 = vpack.c.bf16 %v38_v5, %v37_v2  ;;  %v129_v10 = vld [vmem:[%s1067_s4] sm:$0xff]  ;;  %v130_v11 = vld [vmem:[%s1067_s4 + $0x8] sm:$0xff]  ;;  %v131_v12 = vld [vmem:[%s1067_s4 + $0x10] sm:$0xff]  ;;  %v637_v14 = vpack.c.bf16 %v40_v9, %v39_v8 }
   0x4   :  { %632 = vmatpush3.bf16.msra.mxu0 %v631_v4  ;;  %v132_v13 = vld [vmem:[%s1067_s4 + $0x18] sm:$0xff]  ;;  %v655_v15 = vpack.c.bf16 %v130_v11, %v129_v10  ;;  %v41_v16 = vld [vmem:[%s1065_s2 + $0x30] sm:$0xff] }
   0x5   :  { %633 = vmatprep.subr.bf16.mxu0 %v758_v3  ;;  %v42_v17 = vld [vmem:[%s1065_s2 + $0x38] sm:$0xff]  ;;  %v658_v18 = vpack.c.bf16 %v132_v13, %v131_v12 }
   0x6   :  { %656 = vmatpush3.bf16.msra.mxu1 %v655_v15 }
   0x8   :  { %635 = vmatpush3.bf16.msra.mxu0 %v634_v7 }
   0x9   :  { %636 = vmatprep.subr.bf16.mxu0 %v758_v3 }
   0xa   :  { %13 = vsyncpa [#allocation4], 0  ;;  %657 = vmatprep.subr.bf16.mxu1 %v758_v3  ;;  %v133_v19 = vld [vmem:[%s1067_s4 + $0x20] sm:$0xff]  ;;  %v134_v20 = vld [vmem:[%s1067_s4 + $0x28] sm:$0xff]  ;;  %v640_v21 = vpack.c.bf16 %v42_v17, %v41_v16  ;;  %s761_s16 = smov [#allocation3]  }
   0xb   :  { %v43_v22 = vld [vmem:[%s1065_s2 + $0x40] sm:$0xff]  ;;  %v44_v23 = vld [vmem:[%s1065_s2 + $0x48] sm:$0xff]  ;;  %659 = vmatpush3.bf16.msra.mxu1 %v658_v18  ;;  %v661_v24 = vpack.c.bf16 %v134_v20, %v133_v19  ;;  %v135_v25 = vld [vmem:[%s1067_s4 + $0x30] sm:$0xff]  ;;  %s411_s17 = sshll.u32 %s761_s16, 4  ;;  %s412_s17 = int_to_ptr.vmem [resolvable:$true] %s411_s17 }
   0xc   :  { %638 = vmatpush3.bf16.msra.mxu0 %v637_v14  ;;  %660 = vmatprep.subr.bf16.mxu1 %v758_v3  ;;  %v136_v26 = vld [vmem:[%s1067_s4 + $0x38] sm:$0xff]  ;;  %v643_v27 = vpack.c.bf16 %v44_v23, %v43_v22  ;;  %v45_v28 = vld [vmem:[%s1065_s2 + $0x50] sm:$0xff]  ;;  %v137_v31 = vld [vmem:[%s1067_s4 + $0x40] sm:$0xff]  ;;  %p739_p1 = scmp.lt.s32.totalorder %s412_s17, %s412_s17 }
   0xd   :  { %639 = vmatprep.subr.bf16.mxu0 %v758_v3  ;;  %v46_v29 = vld [vmem:[%s1065_s2 + $0x58] sm:$0xff]  ;;  %v664_v30 = vpack.c.bf16 %v136_v26, %v135_v25  ;;  %v138_v32 = vld [vmem:[%s1067_s4 + $0x48] sm:$0xff]  ;;  %v47_v34 = vld [vmem:[%s1065_s2 + $0x60] sm:$0xff] }
   0xe   :  { %v646_v33 = vpack.c.bf16 %v46_v29, %v45_v28  ;;  %v48_v35 = vld [vmem:[%s1065_s2 + $0x68] sm:$0xff]  ;;  %v667_v36 = vpack.c.bf16 %v138_v32, %v137_v31  ;;  %v49_v38 = vld [vmem:[%s1065_s2 + $0x70] sm:$0xff]  ;;  %v50_v39 = vld [vmem:[%s1065_s2 + $0x78] sm:$0xff] }
   0xf   :  { %662 = vmatpush3.bf16.msra.mxu1 %v661_v24  ;;  %v649_v37 = vpack.c.bf16 %v48_v35, %v47_v34  ;;  %v652_v40 = vpack.c.bf16 %v50_v39, %v49_v38  ;;  %v34_v41 = vld [vmem:[%s1063_s0] sm:$0x3]  ;;  %v139_v42 = vld [vmem:[%s1067_s4 + $0x50] sm:$0xff]  ;;  %v140_v43 = vld [vmem:[%s1067_s4 + $0x58] sm:$0xff] }
  0x10   :  { %641 = vmatpush3.bf16.msra.mxu0 %v640_v21  ;;  %663 = vmatprep.subr.bf16.mxu1 %v758_v3  ;;  %v670_v44 = vpack.c.bf16 %v140_v43, %v139_v42  ;;  %v141_v45 = vld [vmem:[%s1067_s4 + $0x60] sm:$0xff]  ;;  %v142_v46 = vld [vmem:[%s1067_s4 + $0x68] sm:$0xff]  ;;  %v143_v48 = vld [vmem:[%s1067_s4 + $0x70] sm:$0xff] }
  0x11   :  { %642 = vmatprep.subr.bf16.mxu0 %v758_v3  ;;  %v673_v47 = vpack.c.bf16 %v142_v46, %v141_v45  ;;  %v144_v49 = vld [vmem:[%s1067_s4 + $0x78] sm:$0xff]  ;;  %v223_v51 = vld [vmem:[%s1069_s6] sm:$0xff]  ;;  %v224_v52 = vld [vmem:[%s1069_s6 + $0x8] sm:$0xff] }
  0x12   :  { %v676_v50 = vpack.c.bf16 %v144_v49, %v143_v48  ;;  %v225_v53 = vld [vmem:[%s1069_s6 + $0x10] sm:$0xff]  ;;  %v679_v54 = vpack.c.bf16 %v224_v52, %v223_v51  ;;  %v226_v55 = vld [vmem:[%s1069_s6 + $0x18] sm:$0xff]  ;;  %v227_v57 = vld [vmem:[%s1069_s6 + $0x20] sm:$0xff] }
  0x13   :  { %665 = vmatpush3.bf16.msra.mxu1 %v664_v30  ;;  %v682_v56 = vpack.c.bf16 %v226_v55, %v225_v53  ;;  %v228_v58 = vld [vmem:[%s1069_s6 + $0x28] sm:$0xff]  ;;  %v229_v60 = vld [vmem:[%s1069_s6 + $0x30] sm:$0xff]  ;;  %v230_v61 = vld [vmem:[%s1069_s6 + $0x38] sm:$0xff] }
  0x14   :  { %644 = vmatpush3.bf16.msra.mxu0 %v643_v27  ;;  %666 = vmatprep.subr.bf16.mxu1 %v758_v3  ;;  %v685_v59 = vpack.c.bf16 %v228_v58, %v227_v57  ;;  %v688_v62 = vpack.c.bf16 %v230_v61, %v229_v60  ;;  %v231_v63 = vld [vmem:[%s1069_s6 + $0x40] sm:$0xff]  ;;  %v232_v0 = vld [vmem:[%s1069_s6 + $0x48] sm:$0xff]  ;;  %v233_v9 = vld [vmem:[%s1069_s6 + $0x50] sm:$0xff] }
  0x15   :  { %645 = vmatprep.subr.bf16.mxu0 %v758_v3  ;;  %v691_v1 = vpack.c.bf16 %v232_v0, %v231_v63  ;;  %v419_v2 = vld [vmem:[%s1066_s3] ss:$0 sm:$0xff]  ;;  %v234_v10 = vld [vmem:[%s1069_s6 + $0x58] sm:$0xff]  ;;  %v236_v13 = vld [vmem:[%s1069_s6 + $0x68] sm:$0xff] }
  0x16   :  { %v694_v11 = vpack.c.bf16 %v234_v10, %v233_v9  ;;  %v235_v12 = vld [vmem:[%s1069_s6 + $0x60] sm:$0xff]  ;;  %v237_v14 = vld [vmem:[%s1069_s6 + $0x70] sm:$0xff]  ;;  %v238_v15 = vld [vmem:[%s1069_s6 + $0x78] sm:$0xff] }
  0x17   :  { %668 = vmatpush3.bf16.msra.mxu1 %v667_v36  ;;  %v700_v16 = vpack.c.bf16 %v238_v15, %v237_v14  ;;  %v318_v17 = vld [vmem:[%s1064_s1] sm:$0xff]  ;;  %v319_v18 = vld [vmem:[%s1064_s1 + $0x8] sm:$0xff]  ;;  %v320_v19 = vld [vmem:[%s1064_s1 + $0x10] sm:$0xff] }
  0x18   :  { %647 = vmatpush3.bf16.msra.mxu0 %v646_v33  ;;  %669 = vmatprep.subr.bf16.mxu1 %v758_v3  ;;  %v703_v20 = vpack.c.bf16 %v319_v18, %v318_v17  ;;  %v321_v21 = vld [vmem:[%s1064_s1 + $0x18] sm:$0xff]  ;;  %v322_v23 = vld [vmem:[%s1064_s1 + $0x20] sm:$0xff]  ;;  %v323_v24 = vld [vmem:[%s1064_s1 + $0x28] sm:$0xff] }
  0x19   :  { %648 = vmatprep.subr.bf16.mxu0 %v758_v3  ;;  %v706_v22 = vpack.c.bf16 %v321_v21, %v320_v19  ;;  %v709_v25 = vpack.c.bf16 %v323_v24, %v322_v23  ;;  %v324_v26 = vld [vmem:[%s1064_s1 + $0x30] sm:$0xff]  ;;  %v325_v27 = vld [vmem:[%s1064_s1 + $0x38] sm:$0xff]  ;;  %v326_v29 = vld [vmem:[%s1064_s1 + $0x40] sm:$0xff] }
  0x1a   :  { %v712_v28 = vpack.c.bf16 %v325_v27, %v324_v26  ;;  %v327_v30 = vld [vmem:[%s1064_s1 + $0x48] sm:$0xff]  ;;  %v420_v32 = vld [vmem:[%s1068_s5] ss:$0 sm:$0xff]  ;;  %v329_v38 = vld [vmem:[%s1064_s1 + $0x58] sm:$0xff] }
  0x1b   :  { %671 = vmatpush3.bf16.msra.mxu1 %v670_v44  ;;  %v715_v31 = vpack.c.bf16 %v327_v30, %v326_v29  ;;  %v332_v43 = vld [vmem:[%s1064_s1 + $0x70] sm:$0xff]  ;;  %v333_v44 = vld [vmem:[%s1064_s1 + $0x78] sm:$0xff]  ;;  %v421_v46 = vld [vmem:[%s1070_s7] ss:$0 sm:$0xff] }
  0x1c   :  { %650 = vmatpush3.bf16.msra.mxu0 %v649_v37  ;;  %672 = vmatprep.subr.bf16.mxu1 %v758_v3  ;;  %v328_v37 = vld [vmem:[%s1064_s1 + $0x50] sm:$0xff]  ;;  %v724_v45 = vpack.c.bf16 %v333_v44, %v332_v43 }
  0x1d   :  { %651 = vmatprep.subr.bf16.mxu0 %v758_v3  ;;  %v718_v39 = vpack.c.bf16 %v329_v38, %v328_v37 }
  0x1f   :  { %674 = vmatpush3.bf16.msra.mxu1 %v673_v47 }
  0x20   :  { %653 = vmatpush3.bf16.msra.mxu0 %v652_v40  ;;  %675 = vmatprep.subr.bf16.mxu1 %v758_v3  ;;  %v330_v40 = vld [vmem:[%s1064_s1 + $0x60] sm:$0xff] }
  0x21   :  { %678 = vmatprep.subr.bf16.mxu0 %v758_v3 }
  0x23   :  { %523 = vmatmul.mubr.f32.vlgmr.msra.gmra.mrb[0].mxu0 %v34_v41  ;;  %677 = vmatpush3.bf16.msra.mxu1 %v676_v50  ;;  %v331_v41 = vld [vmem:[%s1064_s1 + $0x68] sm:$0xff]  ;;  %s734_s1 = scalar_lea.vmem %s412_s17, 32 }
  0x24   :  { %592 = vmatprep.mubr.msk.f32.mxu0 %vm759_vm0, %v760_v6  ;;  %702 = vmatprep.subr.bf16.mxu1 %v758_v3  ;;  %v721_v42 = vpack.c.bf16 %v331_v41, %v330_v40  ;;  %p735_p0 = scmp.ne.s32.totalorder %s412_s17, %s734_s1  ;;  %p740_p2 = scmp.lt.s32.totalorder %s734_s1, %s734_s1 }
  0x25   :  { %680 = vmatpush3.bf16.msra.mxu0 %v679_v54 }
  0x26   :  { %681 = vmatprep.subr.bf16.mxu0 %v758_v3  ;;  %p741_p3 = por %p740_p2, %p739_p1 }
  0x28   :  { %p742_p4 = pnand %p741_p3, %p735_p0 }
  0x29   :  { %683 = vmatpush3.bf16.msra.mxu0 %v682_v56 }
  0x2a   :  { %684 = vmatprep.subr.bf16.mxu0 %v758_v3 }
  0x2d   :  { %686 = vmatpush3.bf16.msra.mxu0 %v685_v59 }
  0x2e   :  { %687 = vmatprep.subr.bf16.mxu0 %v758_v3 }
  0x31   :  { %689 = vmatpush3.bf16.msra.mxu0 %v688_v62 }
  0x32   :  { %690 = vmatprep.subr.bf16.mxu0 %v758_v3 }
  0x35   :  { %692 = vmatpush3.bf16.msra.mxu0 %v691_v1 }
  0x36   :  { %693 = vmatprep.subr.bf16.mxu0 %v758_v3 }
  0x39   :  { %695 = vmatpush3.bf16.msra.mxu0 %v694_v11 }
  0x3a   :  { %696 = vmatprep.subr.bf16.mxu0 %v758_v3 }
  0xf6   :  { %v124_v4 = vpop.f32.mrb[0].mxu0 }
  0xf7   :  { %v125_v5 = vadd.f32 %v419_v2, %v124_v4  ;;  %v524_v7 = vpop.f32.mrb[1].mxu0 }
  0xf9   :  { %730 = vtanh.f32 %v125_v5 }
 0x103   :  { %v731_v8 = vpop.eup %730 }
 0x104   :  { %558 = vmatmul.mubr.f32.vlgmr.msra.gmra.mrb[0].mxu1 %v731_v8 }
 0x105   :  { %627 = vmatprep.mubr.msk.f32.mxu1 %vm759_vm0, %v760_v6  ;;  %v697_v6 = vpack.c.bf16 %v236_v13, %v235_v12  ;;  %704 = vmatpush3.bf16.msra.mxu1 %v703_v20 }
 0x106   :  { %705 = vmatprep.subr.bf16.mxu1 %v758_v3 }
 0x107   :  { %698 = vmatpush3.bf16.msra.mxu0 %v697_v6 }
 0x108   :  { %699 = vmatprep.subr.bf16.mxu0 %v758_v3 }
 0x109   :  { %707 = vmatpush3.bf16.msra.mxu1 %v706_v22 }
 0x10a   :  { %708 = vmatprep.subr.bf16.mxu1 %v758_v3 }
 0x10b   :  { %701 = vmatpush3.bf16.msra.mxu0 %v700_v16 }
 0x10d   :  { %710 = vmatpush3.bf16.msra.mxu1 %v709_v25 }
 0x10e   :  { %711 = vmatprep.subr.bf16.mxu1 %v758_v3 }
 0x111   :  { %713 = vmatpush3.bf16.msra.mxu1 %v712_v28 }
 0x112   :  { %714 = vmatprep.subr.bf16.mxu1 %v758_v3 }
 0x115   :  { %716 = vmatpush3.bf16.msra.mxu1 %v715_v31 }
 0x116   :  { %717 = vmatprep.subr.bf16.mxu1 %v758_v3 }
 0x119   :  { %719 = vmatpush3.bf16.msra.mxu1 %v718_v39 }
 0x11a   :  { %720 = vmatprep.subr.bf16.mxu1 %v758_v3 }
 0x11d   :  { %722 = vmatpush3.bf16.msra.mxu1 %v721_v42 }
 0x11e   :  { %723 = vmatprep.subr.bf16.mxu1 %v758_v3 }
 0x121   :  { %725 = vmatpush3.bf16.msra.mxu1 %v724_v45 }
 0x1d7   :  { %v218_v33 = vpop.f32.mrb[0].mxu1 }
 0x1d8   :  { %v219_v34 = vadd.f32 %v420_v32, %v218_v33  ;;  %v559_v35 = vpop.f32.mrb[1].mxu1 }
 0x1da   :  { %732 = vtanh.f32 %v219_v34 }
 0x1e4   :  { %v733_v36 = vpop.eup %732 }
 0x1e5   :  { %593 = vmatmul.mubr.f32.vlgmr.msra.gmra.mrb[2].mxu0 %v733_v36 }
 0x2b8   :  { %v312_v47 = vpop.f32.mrb[2].mxu0 }
 0x2b9   :  { %v313_v48 = vadd.f32 %v421_v46, %v312_v47  ;;  %v594_v49 = vpop.f32.mrb[3].mxu0 }
 0x2bb   :  { %316 = vst [vmem:[#allocation2] sm:$0x3] %v313_v48 }
 0x2c2   :  { %v317_v50 = vld [vmem:[#allocation2] sm:$0x3] }
 0x2c3   :  { %628 = vmatmul.mubr.f32.vlgmr.msra.gmra.mrb[2].mxu1 %v317_v50 }
 0x396   :  { %v400_v51 = vpop.f32.mrb[2].mxu1 }
 0x397   :  { %404 = vst [vmem:[#allocation3] sm:$0x3] %v400_v51  ;;  %v629_v52 = vpop.f32.mrb[3].mxu1 }
 0x398   :  { %745 = shalt.err (!%p742_p4)
}
 0x399   :  { %s746_s19 = scalar_lea.hbm %s1071_s8, 32 }
 0x39a   :  { %p747_p5 = scmp.ne.s32.totalorder %s1071_s8, %s746_s19  ;;  %p750_p6 = scmp.lt.u32.totalorder %s746_s19, %s1071_s8 }
 0x39c   :  { %p752_p7 = pnand %p750_p6, %p747_p5 }
 0x39e   :  { %755 = shalt.err (!%p752_p7)
}
 0x39f   :  { %414 = dma.vmem_to_hbm [thread:$0]  %s412_s17, 32, %s1071_s8, [#allocation4]  }
 0x3a0   :  { %756 = dma.done.wait [#allocation4], 32  }
 0x3a1   :  { %757 = vsyncadd [#allocation4], 4294967264 }
 0x3a2   :  { %418 = vsyncpa [#allocation4], 1 }

// kernel: deeponet_forward.2
= control target key start
LH: loop header
LB: loop body
LE: loop exit
PB: predicated region body
PF: predicated region fallthrough
CT: control target
= control target key end

     0   :  { %v1131_v0 = vmov 0   ;;  %s1529_s2 = inlined_call_operand.vmem [shape: f32[128,1], index: 2, kind: input, shape index: {}]   ;;  %s1530_s1 = inlined_call_operand.vmem [shape: f32[128,1], index: 1, kind: input, shape index: {}]   ;;  %s1531_s4 = inlined_call_operand.vmem [shape: f32[128,1], index: 4, kind: input, shape index: {}]   ;;  %s1532_s3 = inlined_call_operand.vmem [shape: f32[128,128], index: 3, kind: input, shape index: {}]   ;;  %s1533_s6 = inlined_call_operand.vmem [shape: f32[128,1], index: 6, kind: input, shape index: {}]   ;;  %s1534_s0 = inlined_call_operand.vmem [shape: f32[1,128], index: 0, kind: input, shape index: {}]   ;;  %s1535_s5 = inlined_call_operand.vmem [shape: f32[128,128], index: 5, kind: input, shape index: {}]   ;;  %s1536_s7 = inlined_call_operand.vmem [shape: f32[128,128], index: 7, kind: output, shape index: {}]  }
   0x1   :  { %1066 = vset.pattern.permute.xlu1 %v1131_v0  ;;  %1065 = vset.pattern.permute.xlu0 %v1131_v0  ;;  %v145_v1 = vld [vmem:[%s1529_s2] sm:$0xff]  ;;  %v146_v3 = vld [vmem:[%s1529_s2 + $0x8] sm:$0xff]  ;;  %v29_v5 = vld [vmem:[%s1530_s1 + $0x18] sm:$0xff] }
   0x2   :  { %v26_v2 = vld [vmem:[%s1530_s1] sm:$0xff]  ;;  %163 = vperm.xlu1 %1066, %v145_v1   ;;  %v27_v4 = vld [vmem:[%s1530_s1 + $0x8] sm:$0xff]  ;;  %v28_v6 = vld [vmem:[%s1530_s1 + $0x10] sm:$0xff] }
   0x3   :  { %45 = vperm.xlu0 %1065, %v26_v2   ;;  %v148_v7 = vld [vmem:[%s1529_s2 + $0x18] sm:$0xff]  ;;  %v147_v8 = vld [vmem:[%s1529_s2 + $0x10] sm:$0xff]  ;;  %v31_v9 = vld [vmem:[%s1530_s1 + $0x28] sm:$0xff] }
   0x4   :  { %v30_v10 = vld [vmem:[%s1530_s1 + $0x20] sm:$0xff]  ;;  %v150_v11 = vld [vmem:[%s1529_s2 + $0x28] sm:$0xff]  ;;  %v33_v13 = vld [vmem:[%s1530_s1 + $0x38] sm:$0xff] }
   0x5   :  { %v149_v12 = vld [vmem:[%s1529_s2 + $0x20] sm:$0xff]  ;;  %v32_v14 = vld [vmem:[%s1530_s1 + $0x30] sm:$0xff]  ;;  %v152_v15 = vld [vmem:[%s1529_s2 + $0x38] sm:$0xff] }
   0x6   :  { %168 = vperm.xlu1 %1066, %v146_v3   ;;  %v151_v16 = vld [vmem:[%s1529_s2 + $0x30] sm:$0xff]  ;;  %v35_v17 = vld [vmem:[%s1530_s1 + $0x48] sm:$0xff]  ;;  %v34_v18 = vld [vmem:[%s1530_s1 + $0x40] sm:$0xff] }
   0x7   :  { %50 = vperm.xlu0 %1065, %v27_v4   ;;  %v154_v19 = vld [vmem:[%s1529_s2 + $0x48] sm:$0xff]  ;;  %v153_v20 = vld [vmem:[%s1529_s2 + $0x40] sm:$0xff]  ;;  %v37_v21 = vld [vmem:[%s1530_s1 + $0x58] sm:$0xff] }
   0x8   :  { %v36_v22 = vld [vmem:[%s1530_s1 + $0x50] sm:$0xff]  ;;  %v156_v23 = vld [vmem:[%s1529_s2 + $0x58] sm:$0xff]  ;;  %v39_v25 = vld [vmem:[%s1530_s1 + $0x68] sm:$0xff] }
   0x9   :  { %v155_v24 = vld [vmem:[%s1529_s2 + $0x50] sm:$0xff]  ;;  %v38_v26 = vld [vmem:[%s1530_s1 + $0x60] sm:$0xff]  ;;  %v158_v27 = vld [vmem:[%s1529_s2 + $0x68] sm:$0xff] }
   0xa   :  { %60 = vperm.xlu1 %1066, %v29_v5   ;;  %v157_v28 = vld [vmem:[%s1529_s2 + $0x60] sm:$0xff]  ;;  %v41_v29 = vld [vmem:[%s1530_s1 + $0x78] sm:$0xff]  ;;  %v40_v30 = vld [vmem:[%s1530_s1 + $0x70] sm:$0xff] }
   0xb   :  { %55 = vperm.xlu0 %1065, %v28_v6   ;;  %v160_v31 = vld [vmem:[%s1529_s2 + $0x78] sm:$0xff]  ;;  %v159_v32 = vld [vmem:[%s1529_s2 + $0x70] sm:$0xff]  ;;  %v290_v33 = vld [vmem:[%s1531_s4 + $0x8] sm:$0xff] }
   0xc   :  { %v289_v34 = vld [vmem:[%s1531_s4] sm:$0xff]  ;;  %v292_v35 = vld [vmem:[%s1531_s4 + $0x18] sm:$0xff]  ;;  %v291_v36 = vld [vmem:[%s1531_s4 + $0x10] sm:$0xff] }
   0xd   :  { %v294_v37 = vld [vmem:[%s1531_s4 + $0x28] sm:$0xff]  ;;  %v293_v38 = vld [vmem:[%s1531_s4 + $0x20] sm:$0xff]  ;;  %v296_v39 = vld [vmem:[%s1531_s4 + $0x38] sm:$0xff] }
   0xe   :  { %178 = vperm.xlu1 %1066, %v148_v7   ;;  %v295_v40 = vld [vmem:[%s1531_s4 + $0x30] sm:$0xff]  ;;  %v298_v41 = vld [vmem:[%s1531_s4 + $0x48] sm:$0xff]  ;;  %v297_v42 = vld [vmem:[%s1531_s4 + $0x40] sm:$0xff] }
   0xf   :  { %173 = vperm.xlu0 %1065, %v147_v8   ;;  %v273_v43 = vld [vmem:[%s1532_s3] sm:$0xff]  ;;  %v300_v44 = vld [vmem:[%s1531_s4 + $0x58] sm:$0xff]  ;;  %v299_v45 = vld [vmem:[%s1531_s4 + $0x50] sm:$0xff] }
  0x10   :  { %920 = vmatprep.mubr.f32.mxu0 %v273_v43  ;;  %v302_v46 = vld [vmem:[%s1531_s4 + $0x68] sm:$0xff]  ;;  %v301_v47 = vld [vmem:[%s1531_s4 + $0x60] sm:$0xff]  ;;  %v304_v48 = vld [vmem:[%s1531_s4 + $0x78] sm:$0xff] }
  0x11   :  { %v303_v49 = vld [vmem:[%s1531_s4 + $0x70] sm:$0xff]  ;;  %v563_v50 = vld [vmem:[%s1533_s6 + $0x8] sm:$0xff]  ;;  %v562_v51 = vld [vmem:[%s1533_s6] sm:$0xff] }
  0x12   :  { %70 = vperm.xlu1 %1066, %v31_v9   ;;  %v565_v52 = vld [vmem:[%s1533_s6 + $0x18] sm:$0xff]  ;;  %v564_v53 = vld [vmem:[%s1533_s6 + $0x10] sm:$0xff]  ;;  %v567_v54 = vld [vmem:[%s1533_s6 + $0x28] sm:$0xff] }
  0x13   :  { %65 = vperm.xlu0 %1065, %v30_v10   ;;  %v566_v55 = vld [vmem:[%s1533_s6 + $0x20] sm:$0xff]  ;;  %v569_v56 = vld [vmem:[%s1533_s6 + $0x38] sm:$0xff]  ;;  %v568_v57 = vld [vmem:[%s1533_s6 + $0x30] sm:$0xff] }
  0x14   :  { %v571_v58 = vld [vmem:[%s1533_s6 + $0x48] sm:$0xff]  ;;  %v570_v59 = vld [vmem:[%s1533_s6 + $0x40] sm:$0xff]  ;;  %v573_v60 = vld [vmem:[%s1533_s6 + $0x58] sm:$0xff] }
  0x15   :  { %v572_v61 = vld [vmem:[%s1533_s6 + $0x50] sm:$0xff]  ;;  %v575_v62 = vld [vmem:[%s1533_s6 + $0x68] sm:$0xff]  ;;  %v574_v63 = vld [vmem:[%s1533_s6 + $0x60] sm:$0xff] }
  0x16   :  { %188 = vperm.xlu1 %1066, %v150_v11   ;;  %v577_v0 = vld [vmem:[%s1533_s6 + $0x78] sm:$0xff]  ;;  %v576_v1 = vld [vmem:[%s1533_s6 + $0x70] sm:$0xff]  ;;  %v1370_v2 = vld [vmem:[%s1534_s0] ss:$0 sm:$0xff] }
  0x17   :  { %183 = vperm.xlu0 %1065, %v149_v12  }
  0x1a   :  { %80 = vperm.xlu1 %1066, %v33_v13  }
  0x1b   :  { %75 = vperm.xlu0 %1065, %v32_v14  }
  0x1e   :  { %198 = vperm.xlu1 %1066, %v152_v15  }
  0x1f   :  { %193 = vperm.xlu0 %1065, %v151_v16  }
  0x22   :  { %90 = vperm.xlu1 %1066, %v35_v17  }
  0x23   :  { %85 = vperm.xlu0 %1065, %v34_v18  }
  0x26   :  { %208 = vperm.xlu1 %1066, %v154_v19  }
  0x27   :  { %203 = vperm.xlu0 %1065, %v153_v20  }
  0x2a   :  { %100 = vperm.xlu1 %1066, %v37_v21  }
  0x2b   :  { %95 = vperm.xlu0 %1065, %v36_v22  }
  0x2e   :  { %218 = vperm.xlu1 %1066, %v156_v23  }
  0x2f   :  { %213 = vperm.xlu0 %1065, %v155_v24  }
  0x32   :  { %110 = vperm.xlu1 %1066, %v39_v25  }
  0x33   :  { %105 = vperm.xlu0 %1065, %v38_v26  }
  0x36   :  { %228 = vperm.xlu1 %1066, %v158_v27  }
  0x37   :  { %223 = vperm.xlu0 %1065, %v157_v28  }
  0x3a   :  { %120 = vperm.xlu1 %1066, %v41_v29  }
  0x3b   :  { %115 = vperm.xlu0 %1065, %v40_v30  }
  0x3e   :  { %238 = vperm.xlu1 %1066, %v160_v31  }
  0x3f   :  { %233 = vperm.xlu0 %1065, %v159_v32  }
  0x42   :  { %312 = vperm.xlu1 %1066, %v290_v33  }
  0x43   :  { %307 = vperm.xlu0 %1065, %v289_v34  }
  0x46   :  { %322 = vperm.xlu1 %1066, %v292_v35  }
  0x47   :  { %317 = vperm.xlu0 %1065, %v291_v36  }
  0x4a   :  { %332 = vperm.xlu1 %1066, %v294_v37  }
  0x4b   :  { %327 = vperm.xlu0 %1065, %v293_v38  }
  0x4e   :  { %342 = vperm.xlu1 %1066, %v296_v39  }
  0x4f   :  { %337 = vperm.xlu0 %1065, %v295_v40  }
  0x52   :  { %352 = vperm.xlu1 %1066, %v298_v41  }
  0x53   :  { %347 = vperm.xlu0 %1065, %v297_v42  }
  0x56   :  { %362 = vperm.xlu1 %1066, %v300_v44  }
  0x57   :  { %357 = vperm.xlu0 %1065, %v299_v45  }
  0x5a   :  { %372 = vperm.xlu1 %1066, %v302_v46  }
  0x5b   :  { %367 = vperm.xlu0 %1065, %v301_v47  }
  0x5e   :  { %382 = vperm.xlu1 %1066, %v304_v48  }
  0x5f   :  { %377 = vperm.xlu0 %1065, %v303_v49  }
  0x62   :  { %585 = vperm.xlu1 %1066, %v563_v50  }
  0x63   :  { %580 = vperm.xlu0 %1065, %v562_v51  }
  0x66   :  { %595 = vperm.xlu1 %1066, %v565_v52  }
  0x67   :  { %590 = vperm.xlu0 %1065, %v564_v53  }
  0x6a   :  { %605 = vperm.xlu1 %1066, %v567_v54  }
  0x6b   :  { %600 = vperm.xlu0 %1065, %v566_v55  }
  0x6e   :  { %615 = vperm.xlu1 %1066, %v569_v56  }
  0x6f   :  { %610 = vperm.xlu0 %1065, %v568_v57  }
  0x72   :  { %625 = vperm.xlu1 %1066, %v571_v58  }
  0x73   :  { %620 = vperm.xlu0 %1065, %v570_v59  }
  0x76   :  { %635 = vperm.xlu1 %1066, %v573_v60  }
  0x77   :  { %630 = vperm.xlu0 %1065, %v572_v61  }
  0x7a   :  { %645 = vperm.xlu1 %1066, %v575_v62  }
  0x7b   :  { %640 = vperm.xlu0 %1065, %v574_v63  }
  0x7e   :  { %655 = vperm.xlu1 %1066, %v577_v0  }
  0x7f   :  { %650 = vperm.xlu0 %1065, %v576_v1  }
  0x81   :  { %v164_v3 = vpop.permute.xlu1 %163 }
  0x82   :  { %v46_v4 = vpop.permute.xlu0 %45 }
  0x83   :  { %v129_v5 = vmul.f32 %v1370_v2, %v46_v4 }
  0x85   :  { %v241_v6 = vadd.f32 %v164_v3, %v129_v5  ;;  %v169_v7 = vpop.permute.xlu1 %168 }
  0x86   :  { %v51_v8 = vpop.permute.xlu0 %50 }
  0x87   :  { %v130_v9 = vmul.f32 %v1370_v2, %v51_v8  ;;  %1067 = vtanh.f32 %v241_v6 }
  0x89   :  { %v242_v10 = vadd.f32 %v169_v7, %v130_v9  ;;  %v61_v11 = vpop.permute.xlu1 %60 }
  0x8a   :  { %v56_v12 = vpop.permute.xlu0 %55  ;;  %v132_v13 = vmul.f32 %v1370_v2, %v61_v11 }
  0x8b   :  { %1069 = vtanh.f32 %v242_v10  ;;  %v131_v14 = vmul.f32 %v1370_v2, %v56_v12 }
  0x8d   :  { %v179_v15 = vpop.permute.xlu1 %178 }
  0x8e   :  { %v174_v16 = vpop.permute.xlu0 %173  ;;  %v244_v17 = vadd.f32 %v179_v15, %v132_v13 }
  0x8f   :  { %v243_v18 = vadd.f32 %v174_v16, %v131_v14 }
  0x90   :  { %1071 = vtanh.f32 %v244_v17 }
  0x91   :  { %1073 = vtanh.f32 %v243_v18  ;;  %v71_v19 = vpop.permute.xlu1 %70  ;;  %v1068_v21 = vpop.eup %1067 }
  0x92   :  { %v66_v20 = vpop.permute.xlu0 %65  ;;  %v134_v23 = vmul.f32 %v1370_v2, %v71_v19 }
  0x93   :  { %v133_v24 = vmul.f32 %v1370_v2, %v66_v20 }
  0x95   :  { %v1070_v22 = vpop.eup %1069  ;;  %v189_v25 = vpop.permute.xlu1 %188 }
  0x96   :  { %v184_v26 = vpop.permute.xlu0 %183  ;;  %v1000_v27 = vpack.c.bf16 %v1070_v22, %v1068_v21  ;;  %v246_v28 = vadd.f32 %v189_v25, %v134_v23 }
  0x97   :  { %v245_v29 = vadd.f32 %v184_v26, %v133_v24 }
  0x98   :  { %1001 = vmatprep.subr.bf16.mxu0 %v1000_v27  ;;  %1075 = vtanh.f32 %v246_v28  ;;  %v275_v28 = vld [vmem:[%s1532_s3 + $0x10] sm:$0xff] }
  0x99   :  { %1003 = vmatpush3.bf16.msra.mxu0 %v1000_v27  ;;  %1077 = vtanh.f32 %v245_v29  ;;  %v81_v30 = vpop.permute.xlu1 %80  ;;  %v276_v29 = vld [vmem:[%s1532_s3 + $0x18] sm:$0xff] }
  0x9a   :  { %v76_v31 = vpop.permute.xlu0 %75  ;;  %v1072_v32 = vpop.eup %1071  ;;  %v136_v34 = vmul.f32 %v1370_v2, %v81_v30  ;;  %v277_v30 = vld [vmem:[%s1532_s3 + $0x20] sm:$0xff] }
  0x9b   :  { %v1074_v33 = vpop.eup %1073  ;;  %v135_v35 = vmul.f32 %v1370_v2, %v76_v31  ;;  %v278_v31 = vld [vmem:[%s1532_s3 + $0x28] sm:$0xff] }
  0x9c   :  { %v1004_v36 = vpack.c.bf16 %v1072_v32, %v1074_v33  ;;  %v279_v32 = vld [vmem:[%s1532_s3 + $0x30] sm:$0xff]  ;;  %v280_v33 = vld [vmem:[%s1532_s3 + $0x38] sm:$0xff] }
  0x9d   :  { %v199_v37 = vpop.permute.xlu1 %198 }
  0x9e   :  { %v194_v38 = vpop.permute.xlu0 %193  ;;  %v248_v39 = vadd.f32 %v199_v37, %v136_v34  ;;  %1005 = vmatprep.subr.bf16.mxu0 %v1004_v36  ;;  %v281_v34 = vld [vmem:[%s1532_s3 + $0x40] sm:$0xff]  ;;  %v284_v37 = vld [vmem:[%s1532_s3 + $0x58] sm:$0xff] }
  0x9f   :  { %v247_v40 = vadd.f32 %v194_v38, %v135_v35  ;;  %1007 = vmatpush3.bf16.msra.mxu0 %v1004_v36  ;;  %v282_v35 = vld [vmem:[%s1532_s3 + $0x48] sm:$0xff]  ;;  %v283_v36 = vld [vmem:[%s1532_s3 + $0x50] sm:$0xff]  ;;  %v285_v38 = vld [vmem:[%s1532_s3 + $0x60] sm:$0xff] }
  0xa0   :  { %1079 = vtanh.f32 %v248_v39  ;;  %v286_v39 = vld [vmem:[%s1532_s3 + $0x68] sm:$0xff] }
  0xa1   :  { %1081 = vtanh.f32 %v247_v40  ;;  %v91_v41 = vpop.permute.xlu1 %90  ;;  %v287_v40 = vld [vmem:[%s1532_s3 + $0x70] sm:$0xff] }
  0xa2   :  { %v86_v42 = vpop.permute.xlu0 %85  ;;  %v1076_v43 = vpop.eup %1075  ;;  %v138_v45 = vmul.f32 %v1370_v2, %v91_v41  ;;  %v288_v41 = vld [vmem:[%s1532_s3 + $0x78] sm:$0xff] }
  0xa3   :  { %v1078_v44 = vpop.eup %1077  ;;  %v137_v46 = vmul.f32 %v1370_v2, %v86_v42  ;;  %v546_v42 = vld [vmem:[%s1535_s5] sm:$0xff] }
  0xa4   :  { %v1008_v47 = vpack.c.bf16 %v1076_v43, %v1078_v44  ;;  %976 = vmatprep.mubr.f32.mxu1 %v546_v42 }
  0xa5   :  { %v209_v48 = vpop.permute.xlu1 %208 }
  0xa6   :  { %v204_v49 = vpop.permute.xlu0 %203  ;;  %v250_v50 = vadd.f32 %v209_v48, %v138_v45  ;;  %1009 = vmatprep.subr.bf16.mxu0 %v1008_v47 }
  0xa7   :  { %v249_v51 = vadd.f32 %v204_v49, %v137_v46  ;;  %1011 = vmatpush3.bf16.msra.mxu0 %v1008_v47 }
  0xa8   :  { %1083 = vtanh.f32 %v250_v50 }
  0xa9   :  { %1085 = vtanh.f32 %v249_v51  ;;  %v101_v52 = vpop.permute.xlu1 %100 }
  0xaa   :  { %v96_v53 = vpop.permute.xlu0 %95  ;;  %v1080_v54 = vpop.eup %1079  ;;  %v140_v56 = vmul.f32 %v1370_v2, %v101_v52 }
  0xab   :  { %v1082_v55 = vpop.eup %1081  ;;  %v139_v57 = vmul.f32 %v1370_v2, %v96_v53 }
  0xac   :  { %v1012_v58 = vpack.c.bf16 %v1080_v54, %v1082_v55 }
  0xad   :  { %v219_v59 = vpop.permute.xlu1 %218 }
  0xae   :  { %v214_v60 = vpop.permute.xlu0 %213  ;;  %v252_v61 = vadd.f32 %v219_v59, %v140_v56  ;;  %1013 = vmatprep.subr.bf16.mxu0 %v1012_v58 }
  0xaf   :  { %v251_v62 = vadd.f32 %v214_v60, %v139_v57  ;;  %1015 = vmatpush3.bf16.msra.mxu0 %v1012_v58 }
  0xb0   :  { %1087 = vtanh.f32 %v252_v61 }
  0xb1   :  { %1089 = vtanh.f32 %v251_v62  ;;  %v111_v63 = vpop.permute.xlu1 %110 }
  0xb2   :  { %v106_v0 = vpop.permute.xlu0 %105  ;;  %v1084_v1 = vpop.eup %1083  ;;  %v142_v4 = vmul.f32 %v1370_v2, %v111_v63 }
  0xb3   :  { %v1086_v3 = vpop.eup %1085  ;;  %v141_v5 = vmul.f32 %v1370_v2, %v106_v0 }
  0xb4   :  { %v1016_v6 = vpack.c.bf16 %v1084_v1, %v1086_v3 }
  0xb5   :  { %v229_v7 = vpop.permute.xlu1 %228 }
  0xb6   :  { %v224_v8 = vpop.permute.xlu0 %223  ;;  %v254_v9 = vadd.f32 %v229_v7, %v142_v4  ;;  %1017 = vmatprep.subr.bf16.mxu0 %v1016_v6 }
  0xb7   :  { %v253_v10 = vadd.f32 %v224_v8, %v141_v5  ;;  %1019 = vmatpush3.bf16.msra.mxu0 %v1016_v6 }
  0xb8   :  { %1091 = vtanh.f32 %v254_v9 }
  0xb9   :  { %1093 = vtanh.f32 %v253_v10  ;;  %v121_v11 = vpop.permute.xlu1 %120 }
  0xba   :  { %v116_v12 = vpop.permute.xlu0 %115  ;;  %v1088_v13 = vpop.eup %1087  ;;  %v144_v15 = vmul.f32 %v1370_v2, %v121_v11 }
  0xbb   :  { %v1090_v14 = vpop.eup %1089  ;;  %v143_v16 = vmul.f32 %v1370_v2, %v116_v12  ;;  %v274_v2 = vld [vmem:[%s1532_s3 + $0x8] sm:$0xff] }
  0xbc   :  { %v1020_v17 = vpack.c.bf16 %v1088_v13, %v1090_v14 }
  0xbd   :  { %v239_v18 = vpop.permute.xlu1 %238 }
  0xbe   :  { %v234_v19 = vpop.permute.xlu0 %233  ;;  %v256_v20 = vadd.f32 %v239_v18, %v144_v15  ;;  %1021 = vmatprep.subr.bf16.mxu0 %v1020_v17 }
  0xbf   :  { %v255_v21 = vadd.f32 %v234_v19, %v143_v16  ;;  %1023 = vmatpush3.bf16.msra.mxu0 %v1020_v17 }
  0xc0   :  { %1095 = vtanh.f32 %v256_v20 }
  0xc1   :  { %1097 = vtanh.f32 %v255_v21  ;;  %v313_v43 = vpop.permute.xlu1 %312 }
  0xc2   :  { %v1092_v22 = vpop.eup %1091  ;;  %v308_v44 = vpop.permute.xlu0 %307 }
  0xc3   :  { %v1094_v23 = vpop.eup %1093 }
  0xc4   :  { %v1024_v24 = vpack.c.bf16 %v1092_v22, %v1094_v23 }
  0xc5   :  { %v323_v45 = vpop.permute.xlu1 %322 }
  0xc6   :  { %1025 = vmatprep.subr.bf16.mxu0 %v1024_v24  ;;  %v318_v46 = vpop.permute.xlu0 %317 }
  0xc7   :  { %1027 = vmatpush3.bf16.msra.mxu0 %v1024_v24 }
  0xc9   :  { %v333_v47 = vpop.permute.xlu1 %332 }
  0xca   :  { %v1096_v25 = vpop.eup %1095  ;;  %v328_v48 = vpop.permute.xlu0 %327 }
  0xcb   :  { %v1098_v26 = vpop.eup %1097 }
  0xcc   :  { %v1028_v27 = vpack.c.bf16 %v1096_v25, %v1098_v26 }
  0xcd   :  { %v343_v53 = vpop.permute.xlu1 %342 }
  0xce   :  { %1029 = vmatprep.subr.bf16.mxu0 %v1028_v27  ;;  %v338_v55 = vpop.permute.xlu0 %337 }
  0xcf   :  { %1031 = vmatpush3.bf16.msra.mxu0 %v1028_v27 }
  0xd1   :  { %v353_v62 = vpop.permute.xlu1 %352 }
  0xd2   :  { %921 = vmatmul.mubr.f32.vlgmr.msra.gmra.mrb[0].mxu0 %v274_v2  ;;  %v348_v0 = vpop.permute.xlu0 %347 }
  0xd3   :  { %923 = vmatprep.mubr.f32.mxu0 %v275_v28 }
  0xd5   :  { %v363_v9 = vpop.permute.xlu1 %362 }
  0xd6   :  { %924 = vmatmul.mubr.f32.gmra.mrb[2].mxu0 %v276_v29  ;;  %v358_v12 = vpop.permute.xlu0 %357 }
  0xd7   :  { %926 = vmatprep.mubr.f32.mxu0 %v277_v30 }
  0xd9   :  { %v373_v23 = vpop.permute.xlu1 %372 }
  0xda   :  { %927 = vmatmul.mubr.f32.gmra.mrb[4].mxu0 %v278_v31  ;;  %v368_v25 = vpop.permute.xlu0 %367 }
  0xdb   :  { %929 = vmatprep.mubr.f32.mxu0 %v279_v32 }
  0xde   :  { %930 = vmatmul.mubr.f32.gmra.mrb[6].mxu0 %v280_v33  ;;  %v383_v33 = vpop.permute.xlu1 %382 }
  0xdf   :  { %932 = vmatprep.mubr.f32.mxu0 %v281_v34 }
  0xe2   :  { %933 = vmatmul.mubr.f32.gmra.mrb[8].mxu0 %v282_v35 }
  0xe3   :  { %935 = vmatprep.mubr.f32.mxu0 %v283_v36  ;;  %v378_v36 = vpop.permute.xlu0 %377 }
  0xe6   :  { %936 = vmatmul.mubr.f32.gmra.mrb[10].mxu0 %v284_v37 }
  0xe7   :  { %938 = vmatprep.mubr.f32.mxu0 %v285_v38 }
  0xea   :  { %939 = vmatmul.mubr.f32.gmra.mrb[12].mxu0 %v286_v39 }
  0xeb   :  { %941 = vmatprep.mubr.f32.mxu0 %v287_v40 }
  0xee   :  { %942 = vmatmul.mubr.f32.gmra.mrb[14].mxu0 %v288_v41 }
 0x1a5   :  { %v922_v49 = vpop.f32.mrb[0].mxu0 }
 0x1a6   :  { %v457_v50 = vadd.f32 %v922_v49, %v313_v43  ;;  %v451_v51 = vpop.f32.mrb[1].mxu0 }
 0x1a7   :  { %v452_v52 = vadd.f32 %v451_v51, %v308_v44  ;;  %v547_v51 = vld [vmem:[%s1535_s5 + $0x8] sm:$0xff] }
 0x1a8   :  { %1099 = vtanh.f32 %v457_v50 }
 0x1a9   :  { %1101 = vtanh.f32 %v452_v52  ;;  %v925_v54 = vpop.f32.mrb[2].mxu0  ;;  %v548_v52 = vld [vmem:[%s1535_s5 + $0x10] sm:$0xff] }
 0x1aa   :  { %v467_v56 = vadd.f32 %v925_v54, %v323_v45  ;;  %v461_v57 = vpop.f32.mrb[3].mxu0  ;;  %v550_v54 = vld [vmem:[%s1535_s5 + $0x20] sm:$0xff] }
 0x1ab   :  { %v462_v58 = vadd.f32 %v461_v57, %v318_v46  ;;  %v553_v57 = vld [vmem:[%s1535_s5 + $0x38] sm:$0xff] }
 0x1ac   :  { %1103 = vtanh.f32 %v467_v56  ;;  %v552_v56 = vld [vmem:[%s1535_s5 + $0x30] sm:$0xff] }
 0x1ad   :  { %1105 = vtanh.f32 %v462_v58  ;;  %v928_v59 = vpop.f32.mrb[4].mxu0  ;;  %v554_v58 = vld [vmem:[%s1535_s5 + $0x40] sm:$0xff] }
 0x1ae   :  { %v477_v60 = vadd.f32 %v928_v59, %v333_v47  ;;  %v471_v61 = vpop.f32.mrb[5].mxu0  ;;  %v555_v59 = vld [vmem:[%s1535_s5 + $0x48] sm:$0xff] }
 0x1af   :  { %v472_v63 = vadd.f32 %v471_v61, %v328_v48  ;;  %v557_v61 = vld [vmem:[%s1535_s5 + $0x58] sm:$0xff] }
 0x1b0   :  { %1107 = vtanh.f32 %v477_v60  ;;  %v556_v60 = vld [vmem:[%s1535_s5 + $0x50] sm:$0xff] }
 0x1b1   :  { %1109 = vtanh.f32 %v472_v63  ;;  %v931_v1 = vpop.f32.mrb[6].mxu0  ;;  %v559_v63 = vld [vmem:[%s1535_s5 + $0x68] sm:$0xff] }
 0x1b2   :  { %v1100_v3 = vpop.eup %1099  ;;  %v487_v4 = vadd.f32 %v931_v1, %v343_v53  ;;  %v481_v5 = vpop.f32.mrb[7].mxu0  ;;  %v549_v53 = vld [vmem:[%s1535_s5 + $0x18] sm:$0xff] }
 0x1b3   :  { %v1102_v6 = vpop.eup %1101  ;;  %v482_v7 = vadd.f32 %v481_v5, %v338_v55  ;;  %v551_v55 = vld [vmem:[%s1535_s5 + $0x28] sm:$0xff]  ;;  %v561_v1 = vld [vmem:[%s1535_s5 + $0x78] sm:$0xff] }
 0x1b4   :  { %1111 = vtanh.f32 %v487_v4  ;;  %v1032_v8 = vpack.c.bf16 %v1100_v3, %v1102_v6  ;;  %v586_v3 = vpop.permute.xlu1 %585  ;;  %v581_v4 = vpop.permute.xlu0 %580 }
 0x1b5   :  { %1113 = vtanh.f32 %v482_v7  ;;  %v934_v10 = vpop.f32.mrb[8].mxu0 }
 0x1b6   :  { %v1104_v11 = vpop.eup %1103  ;;  %v497_v13 = vadd.f32 %v934_v10, %v353_v62  ;;  %v491_v14 = vpop.f32.mrb[9].mxu0  ;;  %1033 = vmatprep.subr.bf16.mxu1 %v1032_v8  ;;  %v558_v62 = vld [vmem:[%s1535_s5 + $0x60] sm:$0xff] }
 0x1b7   :  { %v1106_v15 = vpop.eup %1105  ;;  %v492_v16 = vadd.f32 %v491_v14, %v348_v0  ;;  %1035 = vmatpush3.bf16.msra.mxu1 %v1032_v8  ;;  %v560_v0 = vld [vmem:[%s1535_s5 + $0x70] sm:$0xff] }
 0x1b8   :  { %1115 = vtanh.f32 %v497_v13  ;;  %v1036_v17 = vpack.c.bf16 %v1104_v11, %v1106_v15  ;;  %v596_v5 = vpop.permute.xlu1 %595  ;;  %v591_v6 = vpop.permute.xlu0 %590 }
 0x1b9   :  { %1117 = vtanh.f32 %v492_v16  ;;  %v937_v18 = vpop.f32.mrb[10].mxu0 }
 0x1ba   :  { %v1108_v19 = vpop.eup %1107  ;;  %v507_v20 = vadd.f32 %v937_v18, %v363_v9  ;;  %v501_v21 = vpop.f32.mrb[11].mxu0  ;;  %1037 = vmatprep.subr.bf16.mxu1 %v1036_v17 }
 0x1bb   :  { %v1110_v22 = vpop.eup %1109  ;;  %v502_v24 = vadd.f32 %v501_v21, %v358_v12  ;;  %1039 = vmatpush3.bf16.msra.mxu1 %v1036_v17 }
 0x1bc   :  { %1119 = vtanh.f32 %v507_v20  ;;  %v1040_v26 = vpack.c.bf16 %v1108_v19, %v1110_v22  ;;  %v606_v7 = vpop.permute.xlu1 %605  ;;  %v601_v8 = vpop.permute.xlu0 %600 }
 0x1bd   :  { %1121 = vtanh.f32 %v502_v24  ;;  %v940_v27 = vpop.f32.mrb[12].mxu0 }
 0x1be   :  { %v1112_v2 = vpop.eup %1111  ;;  %v517_v28 = vadd.f32 %v940_v27, %v373_v23  ;;  %v511_v29 = vpop.f32.mrb[13].mxu0  ;;  %1041 = vmatprep.subr.bf16.mxu1 %v1040_v26 }
 0x1bf   :  { %v1114_v30 = vpop.eup %1113  ;;  %v512_v31 = vadd.f32 %v511_v29, %v368_v25  ;;  %1043 = vmatpush3.bf16.msra.mxu1 %v1040_v26 }
 0x1c0   :  { %1123 = vtanh.f32 %v517_v28  ;;  %v1044_v32 = vpack.c.bf16 %v1112_v2, %v1114_v30  ;;  %v616_v13 = vpop.permute.xlu1 %615  ;;  %v611_v15 = vpop.permute.xlu0 %610 }
 0x1c1   :  { %1125 = vtanh.f32 %v512_v31  ;;  %v943_v34 = vpop.f32.mrb[14].mxu0 }
 0x1c2   :  { %v1116_v35 = vpop.eup %1115  ;;  %v527_v37 = vadd.f32 %v943_v34, %v383_v33  ;;  %v521_v38 = vpop.f32.mrb[15].mxu0  ;;  %1045 = vmatprep.subr.bf16.mxu1 %v1044_v32 }
 0x1c3   :  { %v1118_v39 = vpop.eup %1117  ;;  %v522_v40 = vadd.f32 %v521_v38, %v378_v36  ;;  %1047 = vmatpush3.bf16.msra.mxu1 %v1044_v32 }
 0x1c4   :  { %1127 = vtanh.f32 %v527_v37  ;;  %v1048_v41 = vpack.c.bf16 %v1116_v35, %v1118_v39  ;;  %v626_v22 = vpop.permute.xlu1 %625  ;;  %v621_v24 = vpop.permute.xlu0 %620 }
 0x1c5   :  { %1129 = vtanh.f32 %v522_v40 }
 0x1c6   :  { %v1120_v42 = vpop.eup %1119  ;;  %1049 = vmatprep.subr.bf16.mxu1 %v1048_v41 }
 0x1c7   :  { %v1122_v43 = vpop.eup %1121  ;;  %1051 = vmatpush3.bf16.msra.mxu1 %v1048_v41 }
 0x1c8   :  { %v1052_v44 = vpack.c.bf16 %v1120_v42, %v1122_v43  ;;  %v636_v28 = vpop.permute.xlu1 %635  ;;  %v631_v30 = vpop.permute.xlu0 %630 }
 0x1ca   :  { %v1124_v45 = vpop.eup %1123  ;;  %1053 = vmatprep.subr.bf16.mxu1 %v1052_v44 }
 0x1cb   :  { %v1126_v46 = vpop.eup %1125  ;;  %1055 = vmatpush3.bf16.msra.mxu1 %v1052_v44 }
 0x1cc   :  { %v1056_v47 = vpack.c.bf16 %v1124_v45, %v1126_v46  ;;  %v646_v37 = vpop.permute.xlu1 %645  ;;  %v641_v39 = vpop.permute.xlu0 %640 }
 0x1ce   :  { %v1128_v48 = vpop.eup %1127  ;;  %1057 = vmatprep.subr.bf16.mxu1 %v1056_v47 }
 0x1cf   :  { %v1130_v49 = vpop.eup %1129  ;;  %1059 = vmatpush3.bf16.msra.mxu1 %v1056_v47 }
 0x1d0   :  { %v1060_v50 = vpack.c.bf16 %v1128_v48, %v1130_v49  ;;  %v656_v44 = vpop.permute.xlu1 %655  ;;  %v651_v46 = vpop.permute.xlu0 %650 }
 0x1d2   :  { %1061 = vmatprep.subr.bf16.mxu1 %v1060_v50 }
 0x1d3   :  { %1063 = vmatpush3.bf16.msra.mxu1 %v1060_v50 }
 0x1d6   :  { %977 = vmatmul.mubr.f32.vlgmr.msra.gmra.mrb[0].mxu1 %v547_v51 }
 0x1d7   :  { %979 = vmatprep.mubr.f32.mxu1 %v548_v52 }
 0x1da   :  { %980 = vmatmul.mubr.f32.gmra.mrb[2].mxu1 %v549_v53 }
 0x1db   :  { %982 = vmatprep.mubr.f32.mxu1 %v550_v54 }
 0x1de   :  { %983 = vmatmul.mubr.f32.gmra.mrb[4].mxu1 %v551_v55 }
 0x1df   :  { %985 = vmatprep.mubr.f32.mxu1 %v552_v56 }
 0x1e2   :  { %986 = vmatmul.mubr.f32.gmra.mrb[6].mxu1 %v553_v57 }
 0x1e3   :  { %988 = vmatprep.mubr.f32.mxu1 %v554_v58 }
 0x1e6   :  { %989 = vmatmul.mubr.f32.gmra.mrb[8].mxu1 %v555_v59 }
 0x1e7   :  { %991 = vmatprep.mubr.f32.mxu1 %v556_v60 }
 0x1ea   :  { %992 = vmatmul.mubr.f32.gmra.mrb[10].mxu1 %v557_v61 }
 0x1eb   :  { %994 = vmatprep.mubr.f32.mxu1 %v558_v62 }
 0x1ee   :  { %995 = vmatmul.mubr.f32.gmra.mrb[12].mxu1 %v559_v63 }
 0x1ef   :  { %997 = vmatprep.mubr.f32.mxu1 %v560_v0 }
 0x1f2   :  { %998 = vmatmul.mubr.f32.gmra.mrb[14].mxu1 %v561_v1 }
 0x2a9   :  { %v978_v9 = vpop.f32.mrb[0].mxu1 }
 0x2aa   :  { %v730_v10 = vadd.f32 %v978_v9, %v586_v3  ;;  %v724_v11 = vpop.f32.mrb[1].mxu1 }
 0x2ab   :  { %v725_v12 = vadd.f32 %v724_v11, %v581_v4 }
 0x2ac   :  { %804 = vst [vmem:[%s1536_s7 + $0x8] sm:$0xff] %v730_v10 }
 0x2ad   :  { %803 = vst [vmem:[%s1536_s7] sm:$0xff] %v725_v12  ;;  %v981_v14 = vpop.f32.mrb[2].mxu1 }
 0x2ae   :  { %v740_v16 = vadd.f32 %v981_v14, %v596_v5  ;;  %v734_v17 = vpop.f32.mrb[3].mxu1 }
 0x2af   :  { %v735_v18 = vadd.f32 %v734_v17, %v591_v6 }
 0x2b0   :  { %806 = vst [vmem:[%s1536_s7 + $0x18] sm:$0xff] %v740_v16 }
 0x2b1   :  { %805 = vst [vmem:[%s1536_s7 + $0x10] sm:$0xff] %v735_v18  ;;  %v984_v19 = vpop.f32.mrb[4].mxu1 }
 0x2b2   :  { %v750_v20 = vadd.f32 %v984_v19, %v606_v7  ;;  %v744_v21 = vpop.f32.mrb[5].mxu1 }
 0x2b3   :  { %v745_v23 = vadd.f32 %v744_v21, %v601_v8 }
 0x2b4   :  { %808 = vst [vmem:[%s1536_s7 + $0x28] sm:$0xff] %v750_v20 }
 0x2b5   :  { %807 = vst [vmem:[%s1536_s7 + $0x20] sm:$0xff] %v745_v23  ;;  %v987_v25 = vpop.f32.mrb[6].mxu1 }
 0x2b6   :  { %v760_v26 = vadd.f32 %v987_v25, %v616_v13  ;;  %v754_v27 = vpop.f32.mrb[7].mxu1 }
 0x2b7   :  { %v755_v2 = vadd.f32 %v754_v27, %v611_v15 }
 0x2b8   :  { %810 = vst [vmem:[%s1536_s7 + $0x38] sm:$0xff] %v760_v26 }
 0x2b9   :  { %809 = vst [vmem:[%s1536_s7 + $0x30] sm:$0xff] %v755_v2  ;;  %v990_v29 = vpop.f32.mrb[8].mxu1 }
 0x2ba   :  { %v770_v31 = vadd.f32 %v990_v29, %v626_v22  ;;  %v764_v32 = vpop.f32.mrb[9].mxu1 }
 0x2bb   :  { %v765_v33 = vadd.f32 %v764_v32, %v621_v24 }
 0x2bc   :  { %812 = vst [vmem:[%s1536_s7 + $0x48] sm:$0xff] %v770_v31 }
 0x2bd   :  { %811 = vst [vmem:[%s1536_s7 + $0x40] sm:$0xff] %v765_v33  ;;  %v993_v34 = vpop.f32.mrb[10].mxu1 }
 0x2be   :  { %v780_v35 = vadd.f32 %v993_v34, %v636_v28  ;;  %v774_v36 = vpop.f32.mrb[11].mxu1 }
 0x2bf   :  { %v775_v38 = vadd.f32 %v774_v36, %v631_v30 }
 0x2c0   :  { %814 = vst [vmem:[%s1536_s7 + $0x58] sm:$0xff] %v780_v35 }
 0x2c1   :  { %813 = vst [vmem:[%s1536_s7 + $0x50] sm:$0xff] %v775_v38  ;;  %v996_v40 = vpop.f32.mrb[12].mxu1 }
 0x2c2   :  { %v790_v41 = vadd.f32 %v996_v40, %v646_v37  ;;  %v784_v42 = vpop.f32.mrb[13].mxu1 }
 0x2c3   :  { %v785_v43 = vadd.f32 %v784_v42, %v641_v39 }
 0x2c4   :  { %816 = vst [vmem:[%s1536_s7 + $0x68] sm:$0xff] %v790_v41 }
 0x2c5   :  { %815 = vst [vmem:[%s1536_s7 + $0x60] sm:$0xff] %v785_v43  ;;  %v999_v45 = vpop.f32.mrb[14].mxu1 }
 0x2c6   :  { %v800_v47 = vadd.f32 %v999_v45, %v656_v44  ;;  %v794_v48 = vpop.f32.mrb[15].mxu1 }
 0x2c7   :  { %v795_v49 = vadd.f32 %v794_v48, %v651_v46 }
 0x2c8   :  { %818 = vst [vmem:[%s1536_s7 + $0x78] sm:$0xff] %v800_v47 }
 0x2c9   :  { %817 = vst [vmem:[%s1536_s7 + $0x70] sm:$0xff] %v795_v49 }

</bundles_post_ra>
